<compile_context>
chip_gen: v7x
topology: tpu7x:2x2x1
jax: 0.10.0
libtpu: 0.0.40
codegen_flags: <defaults>
</compile_context>

<pallas_src>
import jax
import jax.numpy as jnp
from jax.experimental import pallas as pl
from jax.experimental.pallas import tpu as pltpu


# --------------------------------------------------------------------------
# Kernel: transposed ("lane-dense") layout, activations are [features, tb]
# so the batch sits on the 128-wide lane axis -> unmasked stores, fully
# occupied vregs.  Weights/biases are VMEM-resident (constant index maps).
# --------------------------------------------------------------------------
def qnetwork_kernel(x_ref,
                    w1_ref, b1_ref,
                    w2_ref, b2_ref,
                    w3_ref, b3_ref,
                    w4_ref, b4_ref,
                    out_ref):
    """relu(W @ act + b) per layer; bf16 MXU inputs, f32 accumulation.

    x_ref:   bf16 [in_dim, tb]   (batch on lanes)
    w{i}:    bf16 [out, in], b{i}: f32 [out, 1]
    out_ref: f32  [out_dim, tb]
    """

    def hidden(act_bf16, w_ref, b_ref):
        acc = jnp.dot(w_ref[...], act_bf16,
                      preferred_element_type=jnp.float32)   # MXU, f32 accum
        acc = acc + b_ref[...]                               # [out,1] bcast (VPU)
        # bias-add + ReLU in f32, single downcast -> bf16 inter-layer temp
        return jnp.maximum(acc, 0.0).astype(jnp.bfloat16)

    h = hidden(x_ref[...], w1_ref, b1_ref)
    h = hidden(h, w2_ref, b2_ref)
    h = hidden(h, w3_ref, b3_ref)
    out_ref[...] = (jnp.dot(w4_ref[...], h,
                            preferred_element_type=jnp.float32)
                    + b4_ref[...])                           # final layer: no ReLU


def _resident(a):
    """Full-extent block whose block index never changes -> stays in VMEM."""
    return pl.BlockSpec(a.shape, lambda i: (0,) * a.ndim)


# --------------------------------------------------------------------------
# Tile selection: VMEM-budgeted, balanced across the grid, >= 2 tiles when
# the batch allows it (keeps both v7x TensorCores busy).
# --------------------------------------------------------------------------
_VMEM_LIMIT_BYTES = 32 * 1024 * 1024   # explicit scoped-VMEM limit (all chips)
_TB_MAX = 8192                         # per-step DMA stays a sane size


def _choose_tiling(B, in_dim, hidden_dims, out_dim, weight_bytes):
    b128 = pl.cdiv(B, 128) * 128
    # Per-batch-column VMEM bytes: double-buffered bf16 x, double-buffered
    # f32 out, ~6 B of f32+bf16 layer temps per hidden unit.
    per_col = 2 * in_dim * 2 + 2 * out_dim * 4 + sum(hidden_dims) * 6
    budget = _VMEM_LIMIT_BYTES // 2                 # keep ~half as headroom
    cap = (budget - 2 * weight_bytes) // per_col    # 2x weights: megacore copy
    cap = max(128, min(_TB_MAX, (cap // 128) * 128))
    n_tiles = pl.cdiv(b128, cap)
    if n_tiles == 1 and b128 >= 256:
        n_tiles = 2                                 # v7x: one step per core
    # Balance tiles so padding waste (ragged last tile) stays small.
    tb = pl.cdiv(pl.cdiv(B, n_tiles), 128) * 128
    return tb, n_tiles


# --------------------------------------------------------------------------
# Wrapper
# --------------------------------------------------------------------------
def qnetwork_forward(x, params, *, tb=None):
    """x: [B, input_dim]; params: w{i}: bf16 [out, in], b{i}: f32 [out, 1].

    Returns [B, output_dim] f32.
    """
    B, in_dim = x.shape
    h1 = params["w1"].shape[0]
    h2 = params["w2"].shape[0]
    h3 = params["w3"].shape[0]
    out_dim = params["w4"].shape[0]

    weights = (params["w1"], params["b1"],
               params["w2"], params["b2"],
               params["w3"], params["b3"],
               params["w4"], params["b4"])
    weight_bytes = sum(int(w.size) * w.dtype.itemsize for w in weights)

    if tb is None:
        tb, n_tiles = _choose_tiling(B, in_dim, (h1, h2, h3), out_dim,
                                     weight_bytes)
    else:
        n_tiles = pl.cdiv(B, tb)

    # Single wrapper pass over x: the bf16 downcast (wanted for MXU-native
    # streaming anyway) and the lane-dense transpose fuse into one XLA copy,
    # so there is no separate transpose/pad HBM pass.  No explicit batch
    # padding: the ragged last tile is masked by Pallas.
    x_t = x.astype(jnp.bfloat16).T                  # [in_dim, B], batch on lanes

    flops = 2 * B * (in_dim * h1 + h1 * h2 + h2 * h3 + h3 * out_dim)
    bytes_accessed = B * in_dim * 2 + B * out_dim * 4 + weight_bytes

    out_t = pl.pallas_call(
        qnetwork_kernel,
        out_shape=jax.ShapeDtypeStruct((out_dim, B), jnp.float32),
        grid=(n_tiles,),
        in_specs=[pl.BlockSpec((in_dim, tb), lambda i: (0, i))]   # streamed x
                 + [_resident(w) for w in weights],               # resident W/b
        out_specs=pl.BlockSpec((out_dim, tb), lambda i: (0, i)),  # lane-dense
        compiler_params=pltpu.CompilerParams(
            dimension_semantics=("parallel",),          # megacore-friendly
            vmem_limit_bytes=_VMEM_LIMIT_BYTES),
        cost_estimate=pl.CostEstimate(flops=flops, transcendentals=0,
                                      bytes_accessed=bytes_accessed),
    )(x_t, *weights)

    return out_t.T                                   # back to [B, out_dim]


# --------------------------------------------------------------------------
# Parameter init (nn.Linear-style U(-1/sqrt(fan_in), 1/sqrt(fan_in)))
# --------------------------------------------------------------------------
def init_params(key, input_dim, hidden_dim, output_dim):
    """Weights stored PyTorch-style [out, in] in bf16 (MXU-native);
    biases stored [out, 1] in f32 (elementwise math stays f32)."""
    dims = [(input_dim, hidden_dim),
            (hidden_dim, hidden_dim),
            (hidden_dim, hidden_dim),
            (hidden_dim, output_dim)]
    params = {}
    for i, (fan_in, fan_out) in enumerate(dims, start=1):
        key, kw, kb = jax.random.split(key, 3)
        bound = 1.0 / jnp.sqrt(fan_in)
        params[f"w{i}"] = jax.random.uniform(
            kw, (fan_out, fan_in), jnp.float32, -bound, bound).astype(jnp.bfloat16)
        params[f"b{i}"] = jax.random.uniform(
            kb, (fan_out, 1), jnp.float32, -bound, bound)
    return params


# --------------------------------------------------------------------------
# Pure-JAX reference mirroring the kernel's bf16-weight / f32-accum math
# --------------------------------------------------------------------------
def qnetwork_ref(x, params):
    h = x.astype(jnp.bfloat16).T                     # [in, B]
    for i in (1, 2, 3):
        a = jnp.dot(params[f"w{i}"], h,
                    preferred_element_type=jnp.float32) + params[f"b{i}"]
        h = jnp.maximum(a, 0.0).astype(jnp.bfloat16)
    out = jnp.dot(params["w4"], h,
                  preferred_element_type=jnp.float32) + params["b4"]
    return out.T                                     # [B, out]


if __name__ == "__main__":
    input_dim, hidden_dim, output_dim = 16, 32, 4
    batch = 8

    key = jax.random.PRNGKey(0)
    key, kx = jax.random.split(key)
    params = init_params(key, input_dim, hidden_dim, output_dim)
    x = jax.random.normal(kx, (batch, input_dim), jnp.float32)

    out = jax.block_until_ready(qnetwork_forward(x, params))
    ref = qnetwork_ref(x, params)

    assert out.shape == (batch, output_dim), out.shape
    assert jnp.allclose(out, ref, atol=1e-3, rtol=1e-3), "mismatch vs reference"

    print("KERNEL_OK")
</pallas_src>

<mosaic_0001>
module attributes {stable_mosaic.version = 11 : i64} {
  func.func @qnetwork_kernel(%arg0: i32, %arg1: memref<16x128xbf16, #tpu.memory_space<vmem>>, %arg2: memref<32x16xbf16, #tpu.memory_space<vmem>>, %arg3: memref<32x1xf32, #tpu.memory_space<vmem>>, %arg4: memref<32x32xbf16, #tpu.memory_space<vmem>>, %arg5: memref<32x1xf32, #tpu.memory_space<vmem>>, %arg6: memref<32x32xbf16, #tpu.memory_space<vmem>>, %arg7: memref<32x1xf32, #tpu.memory_space<vmem>>, %arg8: memref<4x32xbf16, #tpu.memory_space<vmem>>, %arg9: memref<4x1xf32, #tpu.memory_space<vmem>>, %arg10: memref<4x128xf32, #tpu.memory_space<vmem>>) attributes {dimension_semantics = [#tpu.dimension_semantics<parallel>], iteration_bounds = array<i64: 1>, scalar_prefetch = 0 : i64, scratch_operands = 0 : i64, tpu.core_type = #tpu.core_type<tc>, window_params = [{transform_indices = @transform_0, window_bounds = array<i64: 16, 128>}, {pipeline_mode = #tpu.pipeline_mode<synchronous>, transform_indices = @transform_1, window_bounds = array<i64: 32, 16>}, {pipeline_mode = #tpu.pipeline_mode<synchronous>, transform_indices = @transform_2, window_bounds = array<i64: 32, 1>}, {pipeline_mode = #tpu.pipeline_mode<synchronous>, transform_indices = @transform_3, window_bounds = array<i64: 32, 32>}, {pipeline_mode = #tpu.pipeline_mode<synchronous>, transform_indices = @transform_4, window_bounds = array<i64: 32, 1>}, {pipeline_mode = #tpu.pipeline_mode<synchronous>, transform_indices = @transform_5, window_bounds = array<i64: 32, 32>}, {pipeline_mode = #tpu.pipeline_mode<synchronous>, transform_indices = @transform_6, window_bounds = array<i64: 32, 1>}, {pipeline_mode = #tpu.pipeline_mode<synchronous>, transform_indices = @transform_7, window_bounds = array<i64: 4, 32>}, {pipeline_mode = #tpu.pipeline_mode<synchronous>, transform_indices = @transform_8, window_bounds = array<i64: 4, 1>}, {transform_indices = @transform_9, window_bounds = array<i64: 4, 128>}]} {
    %c0 = arith.constant 0 : index
    %c0_0 = arith.constant 0 : index
    %0 = vector.load %arg1[%c0, %c0_0] : memref<16x128xbf16, #tpu.memory_space<vmem>>, vector<16x128xbf16>
    %c0_1 = arith.constant 0 : index
    %c0_2 = arith.constant 0 : index
    %1 = vector.load %arg2[%c0_1, %c0_2] : memref<32x16xbf16, #tpu.memory_space<vmem>>, vector<32x16xbf16>
    %cst = arith.constant dense<0.000000e+00> : vector<32x128xf32>
    %2 = tpu.matmul %1, %0, %cst {dimension_numbers = #tpu.dot_dimension_numbers<[1], [0], [0], [1], [0, 0, 1, 1], [], []>} : vector<32x16xbf16>, vector<16x128xbf16>, vector<32x128xf32> -> vector<32x128xf32>
    %c0_3 = arith.constant 0 : index
    %c0_4 = arith.constant 0 : index
    %3 = vector.load %arg3[%c0_3, %c0_4] : memref<32x1xf32, #tpu.memory_space<vmem>>, vector<32x1xf32>
    %4 = vector.broadcast %3 : vector<32x1xf32> to vector<32x128xf32>
    %5 = arith.addf %2, %4 : vector<32x128xf32>
    %cst_5 = arith.constant 0.000000e+00 : f32
    %6 = vector.broadcast %cst_5 : f32 to vector<32x128xf32>
    %7 = arith.maximumf %5, %6 : vector<32x128xf32>
    %8 = arith.truncf %7 : vector<32x128xf32> to vector<32x128xbf16>
    %c0_6 = arith.constant 0 : index
    %c0_7 = arith.constant 0 : index
    %9 = vector.load %arg4[%c0_6, %c0_7] : memref<32x32xbf16, #tpu.memory_space<vmem>>, vector<32x32xbf16>
    %cst_8 = arith.constant dense<0.000000e+00> : vector<32x128xf32>
    %10 = tpu.matmul %9, %8, %cst_8 {dimension_numbers = #tpu.dot_dimension_numbers<[1], [0], [0], [1], [0, 0, 1, 1], [], []>} : vector<32x32xbf16>, vector<32x128xbf16>, vector<32x128xf32> -> vector<32x128xf32>
    %c0_9 = arith.constant 0 : index
    %c0_10 = arith.constant 0 : index
    %11 = vector.load %arg5[%c0_9, %c0_10] : memref<32x1xf32, #tpu.memory_space<vmem>>, vector<32x1xf32>
    %12 = vector.broadcast %11 : vector<32x1xf32> to vector<32x128xf32>
    %13 = arith.addf %10, %12 : vector<32x128xf32>
    %cst_11 = arith.constant 0.000000e+00 : f32
    %14 = vector.broadcast %cst_11 : f32 to vector<32x128xf32>
    %15 = arith.maximumf %13, %14 : vector<32x128xf32>
    %16 = arith.truncf %15 : vector<32x128xf32> to vector<32x128xbf16>
    %c0_12 = arith.constant 0 : index
    %c0_13 = arith.constant 0 : index
    %17 = vector.load %arg6[%c0_12, %c0_13] : memref<32x32xbf16, #tpu.memory_space<vmem>>, vector<32x32xbf16>
    %cst_14 = arith.constant dense<0.000000e+00> : vector<32x128xf32>
    %18 = tpu.matmul %17, %16, %cst_14 {dimension_numbers = #tpu.dot_dimension_numbers<[1], [0], [0], [1], [0, 0, 1, 1], [], []>} : vector<32x32xbf16>, vector<32x128xbf16>, vector<32x128xf32> -> vector<32x128xf32>
    %c0_15 = arith.constant 0 : index
    %c0_16 = arith.constant 0 : index
    %19 = vector.load %arg7[%c0_15, %c0_16] : memref<32x1xf32, #tpu.memory_space<vmem>>, vector<32x1xf32>
    %20 = vector.broadcast %19 : vector<32x1xf32> to vector<32x128xf32>
    %21 = arith.addf %18, %20 : vector<32x128xf32>
    %cst_17 = arith.constant 0.000000e+00 : f32
    %22 = vector.broadcast %cst_17 : f32 to vector<32x128xf32>
    %23 = arith.maximumf %21, %22 : vector<32x128xf32>
    %24 = arith.truncf %23 : vector<32x128xf32> to vector<32x128xbf16>
    %c0_18 = arith.constant 0 : index
    %c0_19 = arith.constant 0 : index
    %25 = vector.load %arg8[%c0_18, %c0_19] : memref<4x32xbf16, #tpu.memory_space<vmem>>, vector<4x32xbf16>
    %cst_20 = arith.constant dense<0.000000e+00> : vector<4x128xf32>
    %26 = tpu.matmul %25, %24, %cst_20 {dimension_numbers = #tpu.dot_dimension_numbers<[1], [0], [0], [1], [0, 0, 1, 1], [], []>} : vector<4x32xbf16>, vector<32x128xbf16>, vector<4x128xf32> -> vector<4x128xf32>
    %c0_21 = arith.constant 0 : index
    %c0_22 = arith.constant 0 : index
    %27 = vector.load %arg9[%c0_21, %c0_22] : memref<4x1xf32, #tpu.memory_space<vmem>>, vector<4x1xf32>
    %28 = vector.broadcast %27 : vector<4x1xf32> to vector<4x128xf32>
    %29 = arith.addf %26, %28 : vector<4x128xf32>
    %c0_23 = arith.constant 0 : index
    %c0_24 = arith.constant 0 : index
    %30 = vector.load %arg10[%c0_23, %c0_24] : memref<4x128xf32, #tpu.memory_space<vmem>>, vector<4x128xf32>
    tpu.vector_store %arg10[%c0_23, %c0_24], %29 {strides = array<i32>} : memref<4x128xf32, #tpu.memory_space<vmem>>, vector<4x128xf32>,
    return
  }
  func.func @transform_0(%arg0: i32) -> (i32, i32) {
    %c0_i32 = arith.constant 0 : i32
    %c0_i32_0 = arith.constant 0 : i32
    return %c0_i32, %arg0 : i32, i32
  }
  func.func @transform_1(%arg0: i32) -> (i32, i32) {
    %c0_i32 = arith.constant 0 : i32
    %c0_i32_0 = arith.constant 0 : i32
    %c0_i32_1 = arith.constant 0 : i32
    return %c0_i32, %c0_i32_0 : i32, i32
  }
  func.func @transform_2(%arg0: i32) -> (i32, i32) {
    %c0_i32 = arith.constant 0 : i32
    %c0_i32_0 = arith.constant 0 : i32
    %c0_i32_1 = arith.constant 0 : i32
    return %c0_i32, %c0_i32_0 : i32, i32
  }
  func.func @transform_3(%arg0: i32) -> (i32, i32) {
    %c0_i32 = arith.constant 0 : i32
    %c0_i32_0 = arith.constant 0 : i32
    %c0_i32_1 = arith.constant 0 : i32
    return %c0_i32, %c0_i32_0 : i32, i32
  }
  func.func @transform_4(%arg0: i32) -> (i32, i32) {
    %c0_i32 = arith.constant 0 : i32
    %c0_i32_0 = arith.constant 0 : i32
    %c0_i32_1 = arith.constant 0 : i32
    return %c0_i32, %c0_i32_0 : i32, i32
  }
  func.func @transform_5(%arg0: i32) -> (i32, i32) {
    %c0_i32 = arith.constant 0 : i32
    %c0_i32_0 = arith.constant 0 : i32
    %c0_i32_1 = arith.constant 0 : i32
    return %c0_i32, %c0_i32_0 : i32, i32
  }
  func.func @transform_6(%arg0: i32) -> (i32, i32) {
    %c0_i32 = arith.constant 0 : i32
    %c0_i32_0 = arith.constant 0 : i32
    %c0_i32_1 = arith.constant 0 : i32
    return %c0_i32, %c0_i32_0 : i32, i32
  }
  func.func @transform_7(%arg0: i32) -> (i32, i32) {
    %c0_i32 = arith.constant 0 : i32
    %c0_i32_0 = arith.constant 0 : i32
    %c0_i32_1 = arith.constant 0 : i32
    return %c0_i32, %c0_i32_0 : i32, i32
  }
  func.func @transform_8(%arg0: i32) -> (i32, i32) {
    %c0_i32 = arith.constant 0 : i32
    %c0_i32_0 = arith.constant 0 : i32
    %c0_i32_1 = arith.constant 0 : i32
    return %c0_i32, %c0_i32_0 : i32, i32
  }
  func.func @transform_9(%arg0: i32) -> (i32, i32) {
    %c0_i32 = arith.constant 0 : i32
    %c0_i32_0 = arith.constant 0 : i32
    return %c0_i32, %arg0 : i32, i32
  }
}

</mosaic_0001>

<bundles_post_ra>
// kernel: tpu_custom_call.1
= control target key start
LH: loop header
LB: loop body
LE: loop exit
PB: predicated region body
PF: predicated region fallthrough
CT: control target
= control target key end

     0   :  { %vm80_vm0 = vcmask 130048   ;;  %v501_v3 = vmov 0   ;;  %s635_s0 = inlined_call_operand.vmem [shape: bf16[16,8], index: 0, kind: input, shape index: {}]   ;;  %s636_s1 = inlined_call_operand.vmem [shape: bf16[32,16], index: 1, kind: input, shape index: {}]   ;;  %s637_s2 = inlined_call_operand.vmem [shape: f32[32,1], index: 2, kind: input, shape index: {}]   ;;  %s638_s3 = inlined_call_operand.vmem [shape: bf16[32,32], index: 3, kind: input, shape index: {}]   ;;  %s639_s4 = inlined_call_operand.vmem [shape: f32[32,1], index: 4, kind: input, shape index: {}]   ;;  %s640_s5 = inlined_call_operand.vmem [shape: bf16[32,32], index: 5, kind: input, shape index: {}]   ;;  %s641_s6 = inlined_call_operand.vmem [shape: f32[32,1], index: 6, kind: input, shape index: {}]   ;;  %s642_s7 = inlined_call_operand.vmem [shape: bf16[4,32], index: 7, kind: input, shape index: {}]   ;;  %s643_s8 = inlined_call_operand.vmem [shape: f32[4,1], index: 8, kind: input, shape index: {}]   ;;  %s644_s9 = inlined_call_operand.hbm [shape: f32[4,8], index: 9, kind: output, shape index: {}]  }
   0x1   :  { %v470_v0 = vld [vmem:[%s635_s0] sm:$0xff]   ;;  %v472_v2 = vld [vmem:[%s636_s1 + $0x8] sm:$0xff]   ;;  %468 = vset.pattern.permute.xlu0 %v501_v3  ;;  %v42_v5 = vld [vmem:[%s637_s2 + $0x10] sm:$0xff]  ;;  %469 = vset.pattern.permute.xlu1 %v501_v3 }
   0x2   :  { %v471_v1 = vld [vmem:[%s636_s1] sm:$0xff]   ;;  %434 = vmatprep.subr.bf16.mxu0 %v470_v0  ;;  %v41_v6 = vld [vmem:[%s637_s2 + $0x8] sm:$0xff]  ;;  %56 = vperm.xlu1 %469, %v42_v5   ;;  %v43_v7 = vld [vmem:[%s637_s2 + $0x18] sm:$0xff] }
   0x3   :  { %435 = vmatpush3.bf16.msra.mxu0 %v470_v0  ;;  %436 = vmatprep.mubr.msk.bf16.mxu0 %vm80_vm0, %v471_v1  ;;  %v40_v4 = vld [vmem:[%s637_s2] sm:$0xff]  ;;  %v147_v9 = vld [vmem:[%s639_s4 + $0x8] sm:$0xff] }
   0x4   :  { %46 = vperm.xlu0 %468, %v40_v4   ;;  %v146_v8 = vld [vmem:[%s639_s4] sm:$0xff] }
   0x6   :  { %437 = vmatmul.mubr.msk.bf16.vlgmr.msra.gmra.mrb[0].mxu0 %vm80_vm0, %v472_v2  ;;  %61 = vperm.xlu1 %469, %v43_v7  }
   0x8   :  { %51 = vperm.xlu0 %468, %v41_v6  }
   0x9   :  { %14 = vsyncpa [#allocation3], 0  ;;  %v148_v10 = vld [vmem:[%s639_s4 + $0x10] sm:$0xff]  ;;  %v149_v11 = vld [vmem:[%s639_s4 + $0x18] sm:$0xff]  ;;  %vm180_vm1 = vcmask 261120   ;;  %v502_v57 = vmov 0.0  }
   0xa   :  { %157 = vperm.xlu1 %469, %v147_v9   ;;  %v246_v12 = vld [vmem:[%s641_s6] sm:$0xff]  ;;  %v247_v13 = vld [vmem:[%s641_s6 + $0x8] sm:$0xff]  ;;  %v248_v14 = vld [vmem:[%s641_s6 + $0x10] sm:$0xff]  ;;  %vm503_vm2 = vmmov 0   ;;  %s504_s20 = smov [#allocation2]  }
   0xb   :  { %v249_v15 = vld [vmem:[%s641_s6 + $0x18] sm:$0xff]  ;;  %v342_v16 = vld [vmem:[%s643_s8] sm:$0xf]  ;;  %v474_v36 = vld [vmem:[%s638_s3 + $0x8] sm:$0xff]   ;;  %s398_s21 = sshll.u32 %s504_s20, 4  ;;  %s399_s21 = int_to_ptr.vmem [resolvable:$true] %s398_s21 }
   0xc   :  { %152 = vperm.xlu0 %468, %v146_v8   ;;  %v473_v17 = vld [vmem:[%s638_s3] sm:$0xff]   ;;  %v476_v56 = vld [vmem:[%s640_s5 + $0x8] sm:$0xff]   ;;  %s477_s22 = scalar_lea.vmem %s399_s21, 64  ;;  %p482_p1 = scmp.lt.s32.totalorder %s399_s21, %s399_s21 }
   0xd   :  { %444 = vmatprep.mubr.msk.bf16.mxu1 %vm180_vm1, %v473_v17  ;;  %v475_v37 = vld [vmem:[%s640_s5] sm:$0xff]   ;;  %p478_p0 = scmp.ne.s32.totalorder %s399_s21, %s477_s22  ;;  %p483_p2 = scmp.lt.s32.totalorder %s477_s22, %s477_s22 }
   0xe   :  { %167 = vperm.xlu1 %469, %v149_v11   ;;  %452 = vmatprep.mubr.msk.bf16.mxu0 %vm180_vm1, %v475_v37 }
   0xf   :  { %p484_p3 = por %p483_p2, %p482_p1 }
  0x10   :  { %162 = vperm.xlu0 %468, %v148_v10  }
  0x11   :  { %p485_p4 = pnand %p484_p3, %p478_p0 }
  0x12   :  { %257 = vperm.xlu1 %469, %v247_v13  }
  0x14   :  { %252 = vperm.xlu0 %468, %v246_v12   ;;  %v341_v12 = vld [vmem:[%s642_s7] sm:$0x3] }
  0x16   :  { %267 = vperm.xlu1 %469, %v249_v15  }
  0x18   :  { %262 = vperm.xlu0 %468, %v248_v14  }
  0x1c   :  { %345 = vperm.xlu0 %468, %v342_v16  }
  0x81   :  { %v57_v18 = vpop.permute.xlu1 %56 }
  0x83   :  { %v47_v19 = vpop.permute.xlu0 %46 }
  0x85   :  { %v62_v23 = vpop.permute.xlu1 %61 }
  0x87   :  { %v52_v26 = vpop.permute.xlu0 %51 }
  0x89   :  { %v158_v39 = vpop.permute.xlu1 %157 }
  0x8b   :  { %v153_v38 = vpop.permute.xlu0 %152 }
  0x8d   :  { %v168_v44 = vpop.permute.xlu1 %167 }
  0x8f   :  { %v163_v40 = vpop.permute.xlu0 %162 }
  0x91   :  { %v258_v59 = vpop.permute.xlu1 %257 }
  0x93   :  { %v253_v58 = vpop.permute.xlu0 %252 }
  0x95   :  { %v268_v0 = vpop.permute.xlu1 %267 }
  0x97   :  { %v263_v60 = vpop.permute.xlu0 %262 }
  0x9b   :  { %v346_v13 = vpop.permute.xlu0 %345 }
  0xd9   :  { %v438_v20 = vpop.f32.mrb[0].mxu0 }
  0xda   :  { %v130_v21 = vadd.f32 %v438_v20, %v57_v18  ;;  %v121_v22 = vpop.f32.mrb[1].mxu0 }
  0xdb   :  { %v122_v24 = vadd.f32 %v121_v22, %v47_v19  ;;  %v439_v25 = vpop.f32.mrb[2].mxu0 }
  0xdc   :  { %v133_v27 = vadd.f32 %v439_v25, %v62_v23  ;;  %v124_v28 = vpop.f32.mrb[3].mxu0  ;;  %v138_v30 = vmax.f32 %v130_v21, 0.0 }
  0xdd   :  { %v125_v29 = vadd.f32 %v124_v28, %v52_v26  ;;  %v136_v32 = vmax.f32 %v122_v24, 0.0 }
  0xde   :  { %v139_v31 = vmax.f32 %v133_v27, 0.0 }
  0xdf   :  { %v137_v33 = vmax.f32 %v125_v29, 0.0 }
  0xe0   :  { %v141_v34 = vpack.c.bf16 %v139_v31, %v138_v30 }
  0xe1   :  { %v140_v35 = vpack.c.bf16 %v137_v33, %v136_v32 }
  0xe3   :  { %440 = vmatprep.subr.bf16.mxu1 %v140_v35 }
  0xe4   :  { %441 = vmatpush3.bf16.msra.mxu1 %v140_v35 }
  0xe5   :  { %442 = vmatprep.subr.bf16.mxu1 %v141_v34 }
  0xe8   :  { %443 = vmatpush3.bf16.msra.mxu1 %v141_v34 }
  0xe9   :  { %456 = vmatprep.subr.bf16.mxu1 %v502_v57 }
  0xeb   :  { %445 = vmatmul.mubr.msk.bf16.vlgmr.msra.gmra.mrb[0].mxu1 %vm180_vm1, %v474_v36 }
  0xec   :  { %460 = vmatprep.mubr.msk.bf16.mxu1 %vm503_vm2, %v502_v57 }
 0x1be   :  { %v446_v41 = vpop.f32.mrb[0].mxu1 }
 0x1bf   :  { %v230_v42 = vadd.f32 %v446_v41, %v163_v40  ;;  %v221_v43 = vpop.f32.mrb[1].mxu1 }
 0x1c0   :  { %v222_v45 = vadd.f32 %v221_v43, %v153_v38  ;;  %v447_v46 = vpop.f32.mrb[2].mxu1 }
 0x1c1   :  { %v233_v47 = vadd.f32 %v447_v46, %v168_v44  ;;  %v224_v48 = vpop.f32.mrb[3].mxu1  ;;  %v238_v50 = vmax.f32 %v230_v42, 0.0 }
 0x1c2   :  { %v225_v49 = vadd.f32 %v224_v48, %v158_v39  ;;  %v236_v52 = vmax.f32 %v222_v45, 0.0 }
 0x1c3   :  { %v239_v51 = vmax.f32 %v233_v47, 0.0 }
 0x1c4   :  { %v237_v53 = vmax.f32 %v225_v49, 0.0 }
 0x1c5   :  { %v241_v54 = vpack.c.bf16 %v239_v51, %v238_v50 }
 0x1c6   :  { %v240_v55 = vpack.c.bf16 %v237_v53, %v236_v52 }
 0x1c8   :  { %448 = vmatprep.subr.bf16.mxu0 %v240_v55 }
 0x1c9   :  { %449 = vmatpush3.bf16.msra.mxu0 %v240_v55 }
 0x1ca   :  { %450 = vmatprep.subr.bf16.mxu0 %v241_v54 }
 0x1cd   :  { %451 = vmatpush3.bf16.msra.mxu0 %v241_v54 }
 0x1d0   :  { %453 = vmatmul.mubr.msk.bf16.vlgmr.msra.gmra.mrb[4].mxu0 %vm180_vm1, %v476_v56 }
 0x2a3   :  { %v454_v61 = vpop.f32.mrb[4].mxu0 }
 0x2a4   :  { %v329_v62 = vadd.f32 %v454_v61, %v263_v60  ;;  %v320_v63 = vpop.f32.mrb[5].mxu0 }
 0x2a5   :  { %v321_v1 = vadd.f32 %v320_v63, %v253_v58  ;;  %v455_v2 = vpop.f32.mrb[6].mxu0 }
 0x2a6   :  { %v332_v3 = vadd.f32 %v455_v2, %v268_v0  ;;  %v323_v4 = vpop.f32.mrb[7].mxu0  ;;  %v337_v6 = vmax.f32 %v329_v62, 0.0 }
 0x2a7   :  { %v324_v5 = vadd.f32 %v323_v4, %v258_v59  ;;  %v335_v8 = vmax.f32 %v321_v1, 0.0 }
 0x2a8   :  { %v338_v7 = vmax.f32 %v332_v3, 0.0 }
 0x2a9   :  { %v336_v9 = vmax.f32 %v324_v5, 0.0 }
 0x2aa   :  { %v340_v10 = vpack.c.bf16 %v338_v7, %v337_v6 }
 0x2ab   :  { %v339_v11 = vpack.c.bf16 %v336_v9, %v335_v8 }
 0x2ad   :  { %457 = vmatpush3.bf16.msra.mxu1 %v339_v11 }
 0x2ae   :  { %458 = vmatprep.subr.bf16.mxu1 %v502_v57 }
 0x2b1   :  { %459 = vmatpush3.bf16.msra.mxu1 %v340_v10 }
 0x2b4   :  { %461 = vmatmul.mubr.msk.bf16.vlgmr.msra.gmra.mrb[4].mxu1 %vm180_vm1, %v341_v12 }
 0x387   :  { %v385_v14 = vpop.f32.mrb[4].mxu1 }
 0x388   :  { %v386_v15 = vadd.f32 %v385_v14, %v346_v13  ;;  %v462_v16 = vpop.f32.mrb[5].mxu1 }
 0x389   :  { %v388_v17 = vpop.f32.mrb[6].mxu1 }
 0x38a   :  { %391 = vst [vmem:[#allocation2] sm:$0xf] %v386_v15  ;;  %v463_v18 = vpop.f32.mrb[7].mxu1 }
 0x38b   :  { %488 = shalt.err (!%p485_p4)
}
 0x38c   :  { %s489_s24 = scalar_lea.hbm %s644_s9, 64 }
 0x38d   :  { %p490_p5 = scmp.ne.s32.totalorder %s644_s9, %s489_s24  ;;  %p493_p6 = scmp.lt.u32.totalorder %s489_s24, %s644_s9 }
 0x38f   :  { %p495_p7 = pnand %p493_p6, %p490_p5 }
 0x391   :  { %498 = shalt.err (!%p495_p7)
}
 0x392   :  { %401 = dma.vmem_to_hbm [thread:$0]  %s399_s21, 64, %s644_s9, [#allocation3]  }
 0x393   :  { %499 = dma.done.wait [#allocation3], 64  }
 0x394   :  { %500 = vsyncadd [#allocation3], 4294967232 }
 0x395   :  { %405 = vsyncpa [#allocation3], 1 }

</bundles_post_ra>
